<compile_context>
chip_gen: v7x
topology: tpu7x:2x2x1
jax: 0.10.0
libtpu: 0.0.40
codegen_flags: <defaults>
</compile_context>

<pallas_src>
import jax
import jax.numpy as jnp
from jax import lax
from jax.experimental import pallas as pl
from jax.experimental.pallas import tpu as pltpu


def _round_up(x, m):
    return (x + m - 1) // m * m


def _stable_sigmoid(x):
    # single exp of a non-positive argument (EUP slot), never overflows
    z = jnp.exp(-jnp.abs(x))
    return jnp.where(x >= 0, 1.0 / (1.0 + z), z / (1.0 + z))


def _make_kernel(true_S, TS, need_mask):
    def kernel(attn_ref, ctx_ref, he_ref, w_wc_ref, w_he_ref, bias_ref,
               out_ref, acc_ref):
        s = pl.program_id(1)

        @pl.when(s == 0)
        def _init():
            acc_ref[...] = jnp.zeros_like(acc_ref)

        a = attn_ref[...].astype(jnp.float32)          # (TB, TS)
        ctx = ctx_ref[...].astype(jnp.float32)         # (TB, TS, D)
        prod = a[:, :, None] * ctx                     # VPU broadcast-mul
        if need_mask:
            # context is NOT padded in HBM: the ragged last sourceL tile may
            # read unspecified data (possibly NaN/Inf); explicit select since
            # zero attn padding alone cannot mask it (0*NaN = NaN).
            idx = s * TS + lax.broadcasted_iota(jnp.int32, (1, TS, 1), 1)
            prod = jnp.where(idx < true_S, prod, 0.0)
        # reduce over TS (second-minor axis): mostly VPU adds, tiny XLU cost.
        acc_ref[...] += jnp.sum(prod, axis=1)          # (TB, D)

        @pl.when(s == pl.num_programs(1) - 1)
        def _finalize():
            wc_term = jnp.sum(acc_ref[...] * w_wc_ref[...],
                              axis=-1, keepdims=True)                 # (TB, 1)
            he_term = jnp.sum(he_ref[...].astype(jnp.float32) * w_he_ref[...],
                              axis=-1, keepdims=True)                 # (TB, 1)
            logit = wc_term + he_term + bias_ref[0, 0]
            out_ref[...] = _stable_sigmoid(logit).astype(out_ref.dtype)

    return kernel


def _choose_tiles(B, S, D, ctx_budget_bytes=3 << 20):
    """Pick (TB, TS).  One context block (TB*TS*D*4 bytes) stays <= ~3 MiB so
    the double-buffered pipeline fits scoped VMEM on every generation
    (v5e/v6e: 128 MiB physical, v7x: 64 MiB) while being large enough to run
    near the HBM roofline.  TB grows jointly with TS (fewer, bigger blocks)."""
    B_pad = _round_up(B, 8)
    elt = 4
    if 8 * S * D * elt <= ctx_budget_bytes:
        TS, S_pad = S, S                     # single reduction step, no S pad
    else:
        # attn's lane dim is sourceL -> TS must be a multiple of 128 when tiled
        TS = max(128, (ctx_budget_bytes // (8 * D * elt)) // 128 * 128)
        S_pad = _round_up(S, TS)             # only attn is padded (cheap)
    TB = 8
    while TB * 2 <= B_pad and TB < 256 and 2 * TB * TS * D * elt <= ctx_budget_bytes:
        TB *= 2
    # keep >= 2 batch tiles when possible so both v7x TensorCores get work
    if B_pad // TB < 2 and B_pad >= 16:
        TB = max(8, _round_up(B_pad // 2, 8))
    return TB, TS, B_pad, S_pad


def copy_forward(attn, emb_t, hidden, context, weight, bias,
                 dim, emb_dim, layers):
    """attn: (B,S)  emb_t: (B,E)  hidden: ((L,B,D),(L,B,D))  context: (B,S,D)
    weight: (1, dim + 2*layers*dim + emb_dim)  bias: (1,)  ->  (B, 1)"""
    B, S = attn.shape
    D = dim
    LD = layers * dim
    F_he = LD + emb_dim

    h0, _c0 = hidden
    # h = hidden[0].transpose(0, 1).contiguous().view(B, -1)
    h_flat = jnp.transpose(h0, (1, 0, 2)).reshape(B, LD)
    # Reference quirk: c = h.view(c.size(0), -1)  -> c IS h.  Fold w_c into
    # w_h ((w_h + w_c).h == w_h.h + w_c.h up to one rounding).
    w = weight.reshape(-1).astype(jnp.float32)
    w_wc = w[:D].reshape(1, D)                                     # lane-dense
    w_he = jnp.concatenate([w[D:D + LD] + w[D + LD:D + 2 * LD],
                            w[D + 2 * LD:]]).reshape(1, F_he)      # lane-dense
    bias2 = jnp.reshape(bias, (1, 1)).astype(jnp.float32)

    he = jnp.concatenate([h_flat, emb_t], axis=1)                  # (B, F_he)

    TB, TS, B_pad, S_pad = _choose_tiles(B, S, D)
    # Pad only the small tensors; context (the big one) is never copied.
    pad_b, pad_s = B_pad - B, S_pad - S
    if pad_b or pad_s:
        attn = jnp.pad(attn, ((0, pad_b), (0, pad_s)))
    if pad_b:
        he = jnp.pad(he, ((0, pad_b), (0, 0)))

    grid = (pl.cdiv(B_pad, TB), S_pad // TS)
    need_mask = (S % TS) != 0
    kernel = _make_kernel(S, TS, need_mask)

    elt = 4
    ctx_block_bytes = TB * TS * D * elt
    # TODO(synk): for extremely large D (a single 8x128xD block >> budget),
    # add a third "arbitrary" grid axis tiling D instead of raising the limit.
    vmem_need = (2 * ctx_block_bytes + 2 * TB * TS * elt + 2 * TB * F_he * elt
                 + (D + F_he) * elt + TB * D * elt + TB * elt)
    vmem_limit = int(min(max(2 * vmem_need, 32 << 20), 64 << 20))

    flops = int(2 * B * S * D + 2 * B * (D + F_he))
    bytes_accessed = int(elt * (B * S + B * S * D + B * F_he + D + F_he + B))

    out = pl.pallas_call(
        kernel,
        out_shape=jax.ShapeDtypeStruct((B_pad, 1), jnp.float32),
        grid_spec=pltpu.PrefetchScalarGridSpec(
            num_scalar_prefetch=0,
            grid=grid,
            in_specs=[
                pl.BlockSpec((TB, TS), lambda b, s: (b, s)),          # attn
                pl.BlockSpec((TB, TS, D), lambda b, s: (b, s, 0)),    # context
                pl.BlockSpec((TB, F_he), lambda b, s: (b, 0)),        # [h|emb]
                pl.BlockSpec((1, D), lambda b, s: (0, 0)),            # w_wc row
                pl.BlockSpec((1, F_he), lambda b, s: (0, 0)),         # w_he row
                pl.BlockSpec(memory_space=pltpu.MemorySpace.SMEM),    # bias
            ],
            out_specs=pl.BlockSpec((TB, 1), lambda b, s: (b, 0)),
            scratch_shapes=[pltpu.VMEM((TB, D), jnp.float32)],
        ),
        compiler_params=pltpu.CompilerParams(
            dimension_semantics=("parallel", "arbitrary"),
            vmem_limit_bytes=vmem_limit,
        ),
        cost_estimate=pl.CostEstimate(
            flops=flops, transcendentals=int(B),
            bytes_accessed=bytes_accessed),
    )(attn, context, he, w_wc, w_he, bias2)

    return out[:B]


def reference_forward(attn, emb_t, hidden, context, weight, bias,
                      dim, emb_dim, layers):
    """Pure-JAX reference mirroring the PyTorch code (including the c=h quirk)."""
    B = attn.shape[0]
    wc = jnp.einsum('bs,bsd->bd', attn, context)
    h = jnp.transpose(hidden[0], (1, 0, 2)).reshape(B, -1)
    c = h
    cat = jnp.concatenate([wc, h, c, emb_t], axis=1)
    return jax.nn.sigmoid(cat @ weight.T + bias)


if __name__ == "__main__":
    # Small synthetic config
    B, S, D, E, L = 2, 8, 32, 16, 2
    F = D + 2 * L * D + E

    key = jax.random.PRNGKey(0)
    k_attn, k_emb, k_h, k_c, k_ctx, k_w, k_b = jax.random.split(key, 7)

    attn_raw = jax.random.uniform(k_attn, (B, S), jnp.float32)
    attn = attn_raw / jnp.sum(attn_raw, axis=1, keepdims=True)
    emb_t = jax.random.normal(k_emb, (B, E), jnp.float32)
    h0 = jax.random.normal(k_h, (L, B, D), jnp.float32)
    c0 = jax.random.normal(k_c, (L, B, D), jnp.float32)
    context = jax.random.normal(k_ctx, (B, S, D), jnp.float32)

    # nn.Linear default init: U(-1/sqrt(F), 1/sqrt(F)), deterministic via PRNG
    bound = 1.0 / (F ** 0.5)
    weight = jax.random.uniform(k_w, (1, F), jnp.float32, -bound, bound)
    bias = jax.random.uniform(k_b, (1,), jnp.float32, -bound, bound)

    p_gen = copy_forward(attn, emb_t, (h0, c0), context, weight, bias,
                         dim=D, emb_dim=E, layers=L)
    p_gen = jax.block_until_ready(p_gen)

    ref = reference_forward(attn, emb_t, (h0, c0), context, weight, bias,
                            dim=D, emb_dim=E, layers=L)
    assert p_gen.shape == (B, 1)
    assert jnp.allclose(p_gen, ref, atol=1e-5, rtol=1e-5), (p_gen, ref)
    print("KERNEL_OK")
</pallas_src>

<mosaic_0001>
module attributes {stable_mosaic.version = 11 : i64} {
  func.func @kernel(%arg0: i32, %arg1: i32, %arg2: memref<8x8xf32, #tpu.memory_space<vmem>>, %arg3: memref<8x8x32xf32, #tpu.memory_space<vmem>>, %arg4: memref<8x80xf32, #tpu.memory_space<vmem>>, %arg5: memref<1x32xf32, #tpu.memory_space<vmem>>, %arg6: memref<1x80xf32, #tpu.memory_space<vmem>>, %arg7: memref<1x1xf32, #tpu.memory_space<smem>>, %arg8: memref<8x1xf32, #tpu.memory_space<vmem>>, %arg9: memref<8x32xf32, #tpu.memory_space<vmem>>) attributes {dimension_semantics = [#tpu.dimension_semantics<parallel>, #tpu.dimension_semantics<arbitrary>], iteration_bounds = array<i64: 1, 1>, scalar_prefetch = 0 : i64, scratch_operands = 1 : i64, tpu.core_type = #tpu.core_type<tc>, window_params = [{transform_indices = @transform_0, window_bounds = array<i64: 8, 8>}, {transform_indices = @transform_1, window_bounds = array<i64: 8, 8, 32>}, {transform_indices = @transform_2, window_bounds = array<i64: 8, 80>}, {pipeline_mode = #tpu.pipeline_mode<synchronous>, transform_indices = @transform_3, window_bounds = array<i64: 1, 32>}, {pipeline_mode = #tpu.pipeline_mode<synchronous>, transform_indices = @transform_4, window_bounds = array<i64: 1, 80>}, {transform_indices = @transform_5, window_bounds = array<i64: 1, 1>}, {transform_indices = @transform_6, window_bounds = array<i64: 8, 1>}]} {
    %c0_i32 = arith.constant 0 : i32
    %0 = arith.cmpi eq, %arg1, %c0_i32 : i32
    %1 = arith.extui %0 : i1 to i32
    %c0_i32_0 = arith.constant 0 : i32
    %2 = arith.cmpi ne, %1, %c0_i32_0 : i32
    scf.if %2 {
      %cst_11 = arith.constant 0.000000e+00 : f32
      %15 = vector.broadcast %cst_11 : f32 to vector<8x32xf32>
      %c0_12 = arith.constant 0 : index
      %c0_13 = arith.constant 0 : index
      %16 = vector.load %arg9[%c0_12, %c0_13] : memref<8x32xf32, #tpu.memory_space<vmem>>, vector<8x32xf32>
      tpu.vector_store %arg9[%c0_12, %c0_13], %15 {strides = array<i32>} : memref<8x32xf32, #tpu.memory_space<vmem>>, vector<8x32xf32>,
    } else {
    }
    %c0 = arith.constant 0 : index
    %c0_1 = arith.constant 0 : index
    %3 = vector.load %arg2[%c0, %c0_1] : memref<8x8xf32, #tpu.memory_space<vmem>>, vector<8x8xf32>
    %c0_2 = arith.constant 0 : index
    %c0_3 = arith.constant 0 : index
    %c0_4 = arith.constant 0 : index
    %4 = vector.load %arg3[%c0_2, %c0_3, %c0_4] : memref<8x8x32xf32, #tpu.memory_space<vmem>>, vector<8x8x32xf32>
    %5 = vector.shape_cast %3 : vector<8x8xf32> to vector<8x8x1xf32>
    %6 = vector.broadcast %5 : vector<8x8x1xf32> to vector<8x8x32xf32>
    %7 = arith.mulf %6, %4 : vector<8x8x32xf32>
    %c0_5 = arith.constant 0 : index
    %c0_6 = arith.constant 0 : index
    %8 = vector.load %arg9[%c0_5, %c0_6] : memref<8x32xf32, #tpu.memory_space<vmem>>, vector<8x32xf32>
    %cst = arith.constant dense<0.000000e+00> : vector<8x32xf32>
    %9 = vector.multi_reduction <add>, %7, %cst [1] : vector<8x8x32xf32> to vector<8x32xf32>
    %10 = arith.addf %8, %9 : vector<8x32xf32>
    %c0_7 = arith.constant 0 : index
    %c0_8 = arith.constant 0 : index
    %11 = vector.load %arg9[%c0_7, %c0_8] : memref<8x32xf32, #tpu.memory_space<vmem>>, vector<8x32xf32>
    tpu.vector_store %arg9[%c0_7, %c0_8], %10 {strides = array<i32>} : memref<8x32xf32, #tpu.memory_space<vmem>>, vector<8x32xf32>,
    %c0_i32_9 = arith.constant 0 : i32
    %12 = arith.cmpi eq, %arg1, %c0_i32_9 : i32
    %13 = arith.extui %12 : i1 to i32
    %c0_i32_10 = arith.constant 0 : i32
    %14 = arith.cmpi ne, %13, %c0_i32_10 : i32
    scf.if %14 {
      %c0_11 = arith.constant 0 : index
      %c0_12 = arith.constant 0 : index
      %15 = vector.load %arg9[%c0_11, %c0_12] : memref<8x32xf32, #tpu.memory_space<vmem>>, vector<8x32xf32>
      %c0_13 = arith.constant 0 : index
      %c0_14 = arith.constant 0 : index
      %16 = vector.load %arg5[%c0_13, %c0_14] : memref<1x32xf32, #tpu.memory_space<vmem>>, vector<1x32xf32>
      %17 = vector.broadcast %16 : vector<1x32xf32> to vector<8x32xf32>
      %18 = arith.mulf %15, %17 : vector<8x32xf32>
      %cst_15 = arith.constant dense<0.000000e+00> : vector<8xf32>
      %19 = vector.multi_reduction <add>, %18, %cst_15 [1] : vector<8x32xf32> to vector<8xf32>
      %20 = vector.shape_cast %19 : vector<8xf32> to vector<8x1xf32>
      %c0_16 = arith.constant 0 : index
      %c0_17 = arith.constant 0 : index
      %21 = vector.load %arg4[%c0_16, %c0_17] : memref<8x80xf32, #tpu.memory_space<vmem>>, vector<8x80xf32>
      %c0_18 = arith.constant 0 : index
      %c0_19 = arith.constant 0 : index
      %22 = vector.load %arg6[%c0_18, %c0_19] : memref<1x80xf32, #tpu.memory_space<vmem>>, vector<1x80xf32>
      %23 = vector.broadcast %22 : vector<1x80xf32> to vector<8x80xf32>
      %24 = arith.mulf %21, %23 : vector<8x80xf32>
      %cst_20 = arith.constant dense<0.000000e+00> : vector<8xf32>
      %25 = vector.multi_reduction <add>, %24, %cst_20 [1] : vector<8x80xf32> to vector<8xf32>
      %26 = vector.shape_cast %25 : vector<8xf32> to vector<8x1xf32>
      %27 = arith.addf %20, %26 : vector<8x1xf32>
      %c0_21 = arith.constant 0 : index
      %c0_22 = arith.constant 0 : index
      %28 = memref.load %arg7[%c0_21, %c0_22] : memref<1x1xf32, #tpu.memory_space<smem>>
      %29 = vector.broadcast %28 : f32 to vector<8x1xf32>
      %30 = arith.addf %27, %29 : vector<8x1xf32>
      %31 = math.absf %30 : vector<8x1xf32>
      %cst_23 = arith.constant 0.000000e+00 : f32
      %32 = vector.broadcast %cst_23 : f32 to vector<8x1xf32>
      %33 = arith.subf %32, %31 : vector<8x1xf32>
      %34 = math.exp %33 : vector<8x1xf32>
      %cst_24 = arith.constant 0.000000e+00 : f32
      %35 = vector.broadcast %cst_24 : f32 to vector<8x1xf32>
      %36 = arith.cmpf oge, %30, %35 : vector<8x1xf32>
      %cst_25 = arith.constant 1.000000e+00 : f32
      %37 = vector.broadcast %cst_25 : f32 to vector<8x1xf32>
      %38 = arith.addf %37, %34 : vector<8x1xf32>
      %cst_26 = arith.constant 1.000000e+00 : f32
      %39 = vector.broadcast %cst_26 : f32 to vector<8x1xf32>
      %40 = arith.divf %39, %38 : vector<8x1xf32>
      %cst_27 = arith.constant 1.000000e+00 : f32
      %41 = vector.broadcast %cst_27 : f32 to vector<8x1xf32>
      %42 = arith.addf %41, %34 : vector<8x1xf32>
      %43 = arith.divf %34, %42 : vector<8x1xf32>
      %44 = arith.select %36, %40, %43 : vector<8x1xi1>, vector<8x1xf32>
      %c0_28 = arith.constant 0 : index
      %c0_29 = arith.constant 0 : index
      %45 = vector.load %arg8[%c0_28, %c0_29] : memref<8x1xf32, #tpu.memory_space<vmem>>, vector<8x1xf32>
      tpu.vector_store %arg8[%c0_28, %c0_29], %44 {strides = array<i32>} : memref<8x1xf32, #tpu.memory_space<vmem>>, vector<8x1xf32>,
    } else {
    }
    return
  }
  func.func @transform_0(%arg0: i32, %arg1: i32) -> (i32, i32) {
    %c0_i32 = arith.constant 0 : i32
    return %arg0, %arg1 : i32, i32
  }
  func.func @transform_1(%arg0: i32, %arg1: i32) -> (i32, i32, i32) {
    %c0_i32 = arith.constant 0 : i32
    %c0_i32_0 = arith.constant 0 : i32
    return %arg0, %arg1, %c0_i32 : i32, i32, i32
  }
  func.func @transform_2(%arg0: i32, %arg1: i32) -> (i32, i32) {
    %c0_i32 = arith.constant 0 : i32
    %c0_i32_0 = arith.constant 0 : i32
    return %arg0, %c0_i32 : i32, i32
  }
  func.func @transform_3(%arg0: i32, %arg1: i32) -> (i32, i32) {
    %c0_i32 = arith.constant 0 : i32
    %c0_i32_0 = arith.constant 0 : i32
    %c0_i32_1 = arith.constant 0 : i32
    return %c0_i32, %c0_i32_0 : i32, i32
  }
  func.func @transform_4(%arg0: i32, %arg1: i32) -> (i32, i32) {
    %c0_i32 = arith.constant 0 : i32
    %c0_i32_0 = arith.constant 0 : i32
    %c0_i32_1 = arith.constant 0 : i32
    return %c0_i32, %c0_i32_0 : i32, i32
  }
  func.func @transform_5(%arg0: i32, %arg1: i32) -> (i32, i32) {
    %c0_i32 = arith.constant 0 : i32
    %c0_i32_0 = arith.constant 0 : i32
    %c0_i32_1 = arith.constant 0 : i32
    return %c0_i32, %c0_i32_0 : i32, i32
  }
  func.func @transform_6(%arg0: i32, %arg1: i32) -> (i32, i32) {
    %c0_i32 = arith.constant 0 : i32
    %c0_i32_0 = arith.constant 0 : i32
    return %arg0, %c0_i32 : i32, i32
  }
}

</mosaic_0001>

<bundles_post_ra>
// kernel: tpu_custom_call.1
= control target key start
LH: loop header
LB: loop body
LE: loop exit
PB: predicated region body
PF: predicated region fallthrough
CT: control target
= control target key end

     0   :  { %12 = vsyncpa [#allocation5], 0  ;;  %s411_s0 = inlined_call_operand.hbm [shape: f32[8,8], index: 0, kind: input, shape index: {}]   ;;  %s412_s1 = inlined_call_operand.hbm [shape: f32[2,8,32], index: 1, kind: input, shape index: {}]   ;;  %s413_s2 = inlined_call_operand.vmem [shape: f32[8,80], index: 2, kind: input, shape index: {}]   ;;  %s414_s3 = inlined_call_operand.vmem [shape: f32[1,32], index: 3, kind: input, shape index: {}]   ;;  %s415_s4 = inlined_call_operand.vmem [shape: f32[1,80], index: 4, kind: input, shape index: {}]   ;;  %s416_s5 = inlined_call_operand.<no memory space> [shape: f32[1,1], index: 5, kind: input, shape index: {}]   ;;  %s417_s6 = inlined_call_operand.vmem [shape: f32[8,1], index: 6, kind: output, shape index: {}]  }
   0x1   :  { %13 = vsyncpa [#allocation7], 0  ;;  %s321_s21 = smov [#allocation4]   ;;  %s273_s25 = scalar_lea.hbm %s411_s0, 128 }
   0x2   :  { %s20_s22 = sshll.u32 %s321_s21, 4  ;;  %p274_p0 = scmp.ne.s32.totalorder %s411_s0, %s273_s25  ;;  %s21_s22 = int_to_ptr.vmem [resolvable:$true] %s20_s22 }
   0x3   :  { %p277_p1 = scmp.lt.u32.totalorder %s273_s25, %s411_s0 }
   0x5   :  { %p279_p2 = pnand %p277_p1, %p274_p0 }
   0x7   :  { %282 = shalt.err (!%p279_p2)
}
   0x8   :  { %s283_s30 = scalar_lea.vmem %s21_s22, 128  ;;  %p288_p4 = scmp.lt.s32.totalorder %s21_s22, %s21_s22 }
   0x9   :  { %p284_p3 = scmp.ne.s32.totalorder %s21_s22, %s283_s30  ;;  %p289_p5 = scmp.lt.s32.totalorder %s283_s30, %s283_s30 }
   0xb   :  { %p290_p6 = por %p289_p5, %p288_p4 }
   0xd   :  { %p291_p7 = pnand %p290_p6, %p284_p3 }
   0xf   :  { %294 = shalt.err (!%p291_p7)
}
  0x10   :  { %23 = dma.hbm_to_vmem [thread:$0]  %s411_s0, 128, %s21_s22, [#allocation5]  }
  0x11   :  { %28 = vsyncadd [#allocation7], 768  ;;  %s322_s9 = smov [#allocation6]   ;;  %s295_s13 = scalar_lea.hbm %s412_s1, 256 }
  0x12   :  { %s29_s10 = sshll.u32 %s322_s9, 4  ;;  %p296_p8 = scmp.ne.s32.totalorder %s412_s1, %s295_s13  ;;  %s30_s10 = int_to_ptr.vmem [resolvable:$true] %s29_s10 }
  0x13   :  { %p299_p9 = scmp.lt.u32.totalorder %s295_s13, %s412_s1 }
  0x15   :  { %p301_p10 = pnand %p299_p9, %p296_p8 }
  0x17   :  { %304 = shalt.err (!%p301_p10)
}
  0x18   :  { %s305_s18 = scalar_lea.vmem %s30_s10, 256  ;;  %s309_s0 = scalar_lea.vmem %s30_s10, 1024 }
  0x19   :  { %p306_p11 = scmp.ne.s32.totalorder %s30_s10, %s305_s18  ;;  %p310_p12 = scmp.lt.s32.totalorder %s30_s10, %s30_s10 }
  0x1a   :  { %p311_p13 = scmp.lt.s32.totalorder %s309_s0, %s305_s18 }
  0x1c   :  { %p312_p0 = por %p311_p13, %p310_p12 }
  0x1e   :  { %p313_p1 = pnand %p312_p0, %p306_p11 }
  0x20   :  { %316 = shalt.err (!%p313_p1)
}
  0x21   :  { %s323_s19 = smov 128   ;;  %s324_s20 = smov 8  }
  0x22   :  { %35 = dma.hbm_to_vmem [thread:$0]  %s412_s1, 256, %s30_s10, [#allocation7], %s323_s19, %s323_s19, %s324_s20  }
  0x23   :  { %317 = dma.done.wait [#allocation5], 128  }
  0x24   :  { %318 = vsyncadd [#allocation5], 4294967168 }
  0x25   :  { %319 = dma.done.wait [#allocation7], 1024  }
  0x26   :  { %320 = vsyncadd [#allocation7], 4294966272  ;;  %v65_v0 = vlaneseq  ;;  %v56_v6 = vld [vmem:[#allocation4] sm:$0xff]  ;;  %vm54_vm0 = vcmask 261120   ;;  %v325_v19 = vmov 0.0   ;;  %v227_v20 = vld [vmem:[%s413_s2] sm:$0xff] }
  0x27   :  { %55 = vst.msk [vmem:[#allocation2] sm:$0xff] %vm54_vm0, %v325_v19  ;;  %v263_v21 = vld [vmem:[%s415_s4] ss:$0 sm:$0xff]  ;;  %vm236_vm1 = vcmask 654336   ;;  %v57_v25 = vld [vmem:[#allocation6] sm:$0xff]  ;;  %v60_v30 = vld [vmem:[#allocation6 + $0x18] sm:$0xff] }
  0x28   :  { %v66_v1 = vshrl.u32 %v65_v0, 7  ;;  %v235_v22 = vmul.f32 %v263_v21, %v227_v20  ;;  %v59_v24 = vld [vmem:[#allocation6 + $0x10] sm:$0xff]  ;;  %v58_v31 = vld [vmem:[#allocation6 + $0x8] sm:$0xff]  ;;  %v61_v43 = vld [vmem:[#allocation6 + $0x20] sm:$0xff]  ;;  %vm195_vm2 = vcmask 1041409   ;;  %vm197_vm3 = vcmask 1042434  }
  0x29   :  { %v62_v42 = vld [vmem:[#allocation6 + $0x28] sm:$0xff]  ;;  %v64_v58 = vld [vmem:[#allocation6 + $0x38] sm:$0xff]  ;;  %v63_v59 = vld [vmem:[#allocation6 + $0x30] sm:$0xff]  ;;  %vm199_vm4 = vcmask 1043459   ;;  %vm201_vm5 = vcmask 1044484   ;;  %vm203_vm6 = vcmask 1045509  }
  0x2a   :  { %v81_v2 = vsub.s32 2, %v66_v1  ;;  %v67_v3 = vsub.s32 0, %v66_v1  ;;  %v88_v4 = vsub.s32 3, %v66_v1  ;;  %v74_v5 = vsub.s32 1, %v66_v1 }
  0x2b   :  { %v102_v11 = vsub.s32 5, %v66_v1  ;;  %v95_v12 = vsub.s32 4, %v66_v1  ;;  %v116_v15 = vsub.s32 7, %v66_v1  ;;  %v109_v16 = vsub.s32 6, %v66_v1 }
  0x2c   :  { %v82_v7 = vrot.slane %v56_v6, %v81_v2  ;;  %v68_v8 = vrot.slane %v56_v6, %v67_v3  ;;  %v89_v9 = vrot.slane %v56_v6, %v88_v4  ;;  %v75_v10 = vrot.slane %v56_v6, %v74_v5 }
  0x2d   :  { %v103_v13 = vrot.slane %v56_v6, %v102_v11  ;;  %v96_v14 = vrot.slane %v56_v6, %v95_v12  ;;  %v117_v17 = vrot.slane %v56_v6, %v116_v15  ;;  %v110_v18 = vrot.slane %v56_v6, %v109_v16 }
  0x2e   :  { %84 = vbcast.lane.b32.xlu1 %v82_v7, 256  ;;  %70 = vbcast.lane.b32.xlu0 %v68_v8, 256  ;;  %v237_v23 = vsel %vm236_vm1, %v235_v22, 0.0  ;;  %vm205_vm7 = vcmask 1046534   ;;  %vm207_vm8 = vcmask 1047559   ;;  %vm254_vm9 = vcmask 7168  }
  0x32   :  { %91 = vbcast.lane.b32.xlu1 %v89_v9, 256  ;;  %77 = vbcast.lane.b32.xlu0 %v75_v10, 256 }
  0x36   :  { %105 = vbcast.lane.b32.xlu1 %v103_v13, 256  ;;  %98 = vbcast.lane.b32.xlu0 %v96_v14, 256 }
  0x3a   :  { %119 = vbcast.lane.b32.xlu1 %v117_v17, 256  ;;  %112 = vbcast.lane.b32.xlu0 %v110_v18, 256 }
  0x5e   :  { %238 = vadd.xlane.f32.xlu1 %v237_v23 }
  0xa0   :  { %v85_v26 = vpop.permute.xlu1 %84  ;;  %v71_v27 = vpop.permute.xlu0 %70 }
  0xa1   :  { %v123_v28 = vmul.f32 %v85_v26, %v59_v24  ;;  %v121_v29 = vmul.f32 %v71_v27, %v57_v25 }
  0xa3   :  { %v145_v32 = vsel %vm54_vm0, %v123_v28, 0.0  ;;  %v131_v33 = vsel %vm54_vm0, %v121_v29, 0.0 }
  0xa4   :  { %v146_v34 = vrot.slane %v145_v32, 4  ;;  %v132_v35 = vrot.slane %v131_v33, 4  ;;  %v92_v36 = vpop.permute.xlu1 %91  ;;  %v78_v37 = vpop.permute.xlu0 %77 }
  0xa5   :  { %v124_v38 = vmul.f32 %v92_v36, %v60_v30  ;;  %v122_v39 = vmul.f32 %v78_v37, %v58_v31 }
  0xa6   :  { %v147_v40 = vadd.f32 %v146_v34, %v145_v32  ;;  %v133_v41 = vadd.f32 %v132_v35, %v131_v33 }
  0xa7   :  { %v152_v44 = vsel %vm54_vm0, %v124_v38, 0.0  ;;  %v138_v45 = vsel %vm54_vm0, %v122_v39, 0.0 }
  0xa8   :  { %v148_v46 = vrot.slane %v147_v40, 2  ;;  %v134_v47 = vrot.slane %v133_v41, 2  ;;  %v153_v48 = vrot.slane %v152_v44, 4  ;;  %v139_v49 = vrot.slane %v138_v45, 4  ;;  %v106_v50 = vpop.permute.xlu1 %105  ;;  %v99_v51 = vpop.permute.xlu0 %98 }
  0xa9   :  { %v126_v52 = vmul.f32 %v106_v50, %v62_v42  ;;  %v125_v53 = vmul.f32 %v99_v51, %v61_v43 }
  0xaa   :  { %v149_v54 = vadd.f32 %v148_v46, %v147_v40  ;;  %v135_v55 = vadd.f32 %v134_v47, %v133_v41  ;;  %v154_v56 = vadd.f32 %v153_v48, %v152_v44  ;;  %v140_v57 = vadd.f32 %v139_v49, %v138_v45  ;;  %v129_v45 = vld [vmem:[#allocation2] sm:$0xff] }
  0xab   :  { %v166_v60 = vsel %vm54_vm0, %v126_v52, 0.0  ;;  %v159_v61 = vsel %vm54_vm0, %v125_v53, 0.0  ;;  %v262_v49 = vld [vmem:[%s414_s3] ss:$0 sm:$0xff] }
  0xac   :  { %v155_v62 = vrot.slane %v154_v56, 2  ;;  %v141_v63 = vrot.slane %v140_v57, 2  ;;  %v120_v0 = vpop.permute.xlu1 %119  ;;  %v113_v1 = vpop.permute.xlu0 %112  ;;  %v167_v2 = vrot.slane %v166_v60, 4  ;;  %v160_v3 = vrot.slane %v159_v61, 4 }
  0xad   :  { %v128_v4 = vmul.f32 %v120_v0, %v64_v58  ;;  %v127_v5 = vmul.f32 %v113_v1, %v63_v59  ;;  %v150_v6 = vrot.slane %v149_v54, 1  ;;  %v136_v7 = vrot.slane %v135_v55, 1 }
  0xae   :  { %v156_v8 = vadd.f32 %v155_v62, %v154_v56  ;;  %v142_v9 = vadd.f32 %v141_v63, %v140_v57  ;;  %v168_v10 = vadd.f32 %v167_v2, %v166_v60  ;;  %v161_v11 = vadd.f32 %v160_v3, %v159_v61 }
  0xaf   :  { %v180_v12 = vsel %vm54_vm0, %v128_v4, 0.0  ;;  %v173_v13 = vsel %vm54_vm0, %v127_v5, 0.0  ;;  %v137_v20 = vadd.f32 %v136_v7, %v135_v55  ;;  %v151_v24 = vadd.f32 %v150_v6, %v149_v54 }
  0xb0   :  { %v157_v14 = vrot.slane %v156_v8, 1  ;;  %v143_v15 = vrot.slane %v142_v9, 1  ;;  %v181_v16 = vrot.slane %v180_v12, 4  ;;  %v174_v17 = vrot.slane %v173_v13, 4 }
  0xb1   :  { %v169_v18 = vrot.slane %v168_v10, 2  ;;  %v162_v19 = vrot.slane %v161_v11, 2  ;;  %v242_v54 = vstv %s416_s5 }
  0xb2   :  { %v144_v21 = vadd.f32 %v143_v15, %v142_v9  ;;  %v182_v22 = vadd.f32 %v181_v16, %v180_v12  ;;  %v175_v23 = vadd.f32 %v174_v17, %v173_v13  ;;  %v158_v27 = vadd.f32 %v157_v14, %v156_v8 }
  0xb3   :  { %v170_v25 = vadd.f32 %v169_v18, %v168_v10  ;;  %v163_v26 = vadd.f32 %v162_v19, %v161_v11 }
  0xb4   :  { %v196_v28 = vsel %vm195_vm2, %v144_v21, %v137_v20  ;;  %v183_v29 = vrot.slane %v182_v22, 2  ;;  %v176_v30 = vrot.slane %v175_v23, 2 }
  0xb5   :  { %v198_v31 = vsel %vm197_vm3, %v151_v24, %v196_v28  ;;  %v171_v32 = vrot.slane %v170_v25, 1  ;;  %v164_v33 = vrot.slane %v163_v26, 1 }
  0xb6   :  { %v200_v34 = vsel %vm199_vm4, %v158_v27, %v198_v31  ;;  %v184_v35 = vadd.f32 %v183_v29, %v182_v22  ;;  %v177_v36 = vadd.f32 %v176_v30, %v175_v23 }
  0xb7   :  { %v172_v37 = vadd.f32 %v171_v32, %v170_v25  ;;  %v165_v38 = vadd.f32 %v164_v33, %v163_v26 }
  0xb8   :  { %v185_v39 = vrot.slane %v184_v35, 1  ;;  %v178_v40 = vrot.slane %v177_v36, 1 }
  0xb9   :  { %v202_v41 = vsel %vm201_vm5, %v165_v38, %v200_v34 }
  0xba   :  { %v186_v42 = vadd.f32 %v185_v39, %v184_v35  ;;  %v179_v43 = vadd.f32 %v178_v40, %v177_v36  ;;  %v204_v44 = vsel %vm203_vm6, %v172_v37, %v202_v41 }
  0xbc   :  { %v206_v46 = vsel %vm205_vm7, %v179_v43, %v204_v44 }
  0xbd   :  { %v208_v47 = vsel %vm207_vm8, %v186_v42, %v206_v46 }
  0xbe   :  { %v210_v48 = vadd.f32 %v208_v47, %v129_v45 }
  0xc0   :  { %211 = vst.msk [vmem:[#allocation2] sm:$0xff] %vm54_vm0, %v210_v48 }
  0xc7   :  { %v215_v50 = vld [vmem:[#allocation2] sm:$0xff] }
  0xc8   :  { %v223_v51 = vmul.f32 %v262_v49, %v215_v50 }
  0xca   :  { %v224_v52 = vsel %vm54_vm0, %v223_v51, 0.0 }
  0xcb   :  { %225 = vadd.xlane.f32.xlu0 %v224_v52 }
  0xeb   :  { %v239_v53 = vpop.xlane.xlu1 %238 }
 0x158   :  { %v226_v55 = vpop.xlane.xlu0 %225 }
 0x159   :  { %v240_v56 = vadd.f32 %v239_v53, %v226_v55 }
 0x15b   :  { %v243_v57 = vadd.f32 %v242_v54, %v240_v56 }
 0x15d   :  { %v244_v58 = vand.u32 2147483647, %v243_v57  ;;  %vm248_vm10 = vcmp.ge.f32.partialorder %v243_v57, 0.0 }
 0x15f   :  { %v245_v59 = vsub.f32 0.0, %v244_v58 }
 0x161   :  { %v246_v60 = vmul.f32 1.442695, %v245_v59 }
 0x163   :  { %269 = vpow2.f32 %v246_v60 }
 0x16d   :  { %v270_v61 = vpop.eup %269 }
 0x16e   :  { %v249_v62 = vadd.f32 1.0, %v270_v61 }
 0x170   :  { %271 = vrcp.f32 %v249_v62 }
 0x17a   :  { %v272_v63 = vpop.eup %271 }
 0x17b   :  { %v252_v0 = vmul.f32 %v272_v63, %v270_v61 }
 0x17d   :  { %v253_v1 = vsel %vm248_vm10, %v272_v63, %v252_v0 }
 0x17e   :  { %255 = vst.msk [vmem:[%s417_s6] sm:$0xff] %vm254_vm9, %v253_v1 }
 0x17f   :  { %260 = vsyncpa [#allocation5], 1 }
 0x180   :  { %261 = vsyncpa [#allocation7], 1 }

</bundles_post_ra>
